<compile_context>
chip_gen: v5e
topology: v5e:2x2
jax: 0.10.0
libtpu: 0.0.40
codegen_flags: <defaults>
</compile_context>

<pallas_src>
import functools
import math

import jax
import jax.numpy as jnp
from jax.experimental import pallas as pl
from jax.experimental.pallas import tpu as pltpu

_LOG_2PI = math.log(2.0 * math.pi)

# Full-precision f32 matmul on the MXU (the reformulated log-density is exact
# up to reassociation; HIGHEST keeps it within ~1e-5 of the elementwise ref).
_dot_f32 = functools.partial(jnp.dot,
                             preferred_element_type=jnp.float32,
                             precision=jax.lax.Precision.HIGHEST)


def _vmem_cap_bytes():
    """Generation-aware VMEM budget (leave headroom for Mosaic scratch)."""
    try:
        info = pltpu.get_tpu_info()
        phys = int(getattr(info, "vmem_capacity_bytes", 64 * 1024 * 1024))
    except Exception:  # no TPU info available -> be conservative (v7x-sized)
        phys = 64 * 1024 * 1024
    # 75% of physical, capped: v5e/v6e (128 MiB) -> 96 MiB, v7x (64 MiB) -> 48 MiB.
    return max(16 * 1024 * 1024, min(phys * 3 // 4, 100 * 1024 * 1024))


# ---------------------------------------------------------------------------
# Pallas kernels
# ---------------------------------------------------------------------------
def _make_gauss_kernel(use_marg):
    """Fused Gaussian log-density + scope-sum as MXU matmuls."""

    if use_marg:
        def kernel(x_ref, marg_ref, a_ref, b_ref, c_ref, out_ref):
            # x:[tb,K]  marg:[tb,K]  a/b/c:[K,Gp]  out:[tb,Gp]
            x = x_ref[...].astype(jnp.float32)
            w = 1.0 - jnp.clip(marg_ref[...].astype(jnp.float32), 0.0, 1.0)
            xw = x * w                              # x * (1 - marg)
            acc = _dot_f32(x * xw, a_ref[...])      # (x^2*w) @ inv_sigma
            acc = acc - 2.0 * _dot_f32(xw, b_ref[...])   # -2*(x*w) @ (mu*inv)
            acc = acc + _dot_f32(w, c_ref[...])     # w @ (mu^2*inv + log s + log2pi)
            out_ref[...] = (-0.5 * acc).astype(out_ref.dtype)
    else:
        def kernel(x_ref, a_ref, b_ref, c_ref, out_ref):
            # x:[tb,K]  a/b:[K,Gp]  c:[1,Gp] (pre-summed over scope)  out:[tb,Gp]
            x = x_ref[...].astype(jnp.float32)
            acc = _dot_f32(x * x, a_ref[...])
            acc = acc - 2.0 * _dot_f32(x, b_ref[...])
            acc = acc + c_ref[...]                  # broadcast [1,Gp] -> [tb,Gp]
            out_ref[...] = (-0.5 * acc).astype(out_ref.dtype)

    return kernel


def _gauss_pallas_call(x, marg, a_mat, b_mat, c_mat, *, use_marg, tile_rows):
    """Tiled pallas_call over the batch axis.  x:[B,K], params:[K,Gp]/[1,Gp]."""
    B, K = x.shape
    Gp = a_mat.shape[1]
    c_rows = c_mat.shape[0]
    cap = _vmem_cap_bytes()

    # ---- batch tile size ---------------------------------------------------
    tb = max(1, min(int(tile_rows), B))
    # v7x megacore: 2 TCs share the "parallel" batch axis -> prefer >=4 grid
    # steps (>=2 per core) whenever the batch is big enough.
    while B >= 32 and tb > 8 and pl.cdiv(B, tb) < 4:
        tb = max(8, tb // 2)

    # VMEM clamp: double-buffered [tb,*] blocks + ~2x fp32 temporaries on top
    # of the (double-buffered) resident parameter matrices.
    param_bytes = 8 * Gp * (2 * K + c_rows)
    per_row_bytes = 4 * (K * (2 if use_marg else 1) + Gp)
    budget = max(cap - param_bytes - (4 << 20), 1 << 20)
    max_rows = max(8, budget // (4 * per_row_bytes))
    tb = min(tb, max_rows)
    if tb < B:
        tb = max(8, (tb // 8) * 8)       # (8,128) rule on the sublane axis
    grid = (pl.cdiv(B, tb),)

    est_vmem = 4 * per_row_bytes * tb + param_bytes
    vmem_limit = int(min(cap, max(2 * est_vmem, 32 << 20)))

    # ---- specs ---------------------------------------------------------------
    in_specs = [pl.BlockSpec((tb, K), lambda i: (i, 0))]
    inputs = [x]
    if use_marg:
        in_specs.append(pl.BlockSpec((tb, K), lambda i: (i, 0)))
        inputs.append(marg)
    in_specs += [
        pl.BlockSpec((K, Gp), lambda i: (0, 0)),       # inv_sigma (resident)
        pl.BlockSpec((K, Gp), lambda i: (0, 0)),       # mu * inv_sigma
        pl.BlockSpec((c_rows, Gp), lambda i: (0, 0)),  # constant term
    ]
    inputs += [a_mat, b_mat, c_mat]
    out_spec = pl.BlockSpec((tb, Gp), lambda i: (i, 0))   # lane-dense (Gp%128==0)

    return pl.pallas_call(
        _make_gauss_kernel(use_marg),
        out_shape=jax.ShapeDtypeStruct((B, Gp), jnp.float32),
        grid=grid,
        in_specs=in_specs,
        out_specs=out_spec,
        compiler_params=pltpu.CompilerParams(
            dimension_semantics=("parallel",),
            vmem_limit_bytes=vmem_limit),
    )(*inputs)


def _gauss_vector_forward(inputs, marginalized, means, sigma_params, scope,
                          args, *, tile_rows=1024):
    """GaussVector.forward: [B,F] inputs -> [B,num_gauss] scope log-densities."""
    B, F = inputs.shape
    L, G = means.shape
    Gp = int(pl.cdiv(G, 128)) * 128     # lane-dense output width

    # --- parameter preprocessing: tiny [L,G] ops hoisted out of the kernel ---
    if sigma_params is not None:
        sigma = (args.gauss_min_sigma
                 + (args.gauss_max_sigma - args.gauss_min_sigma)
                 * jax.nn.sigmoid(sigma_params.astype(jnp.float32)))
        inv_sigma = 1.0 / sigma
        log_sigma = jnp.log(sigma)
    else:
        inv_sigma = jnp.ones((L, G), jnp.float32)     # sigma (variance) == 1.0
        log_sigma = jnp.zeros((L, G), jnp.float32)

    mu = means.astype(jnp.float32)
    if args.gauss_max_mean:                 # truthiness -- matches torch exactly
        assert args.gauss_min_mean is not None
        mean_range = args.gauss_max_mean - args.gauss_min_mean
        mu = jax.nn.sigmoid(mu) * mean_range + args.gauss_min_mean

    a_mat = inv_sigma                                          # [L,G]
    b_mat = mu * inv_sigma                                     # [L,G]
    c_mat = mu * mu * inv_sigma + log_sigma + _LOG_2PI         # [L,G]

    if Gp != G:      # zero-pad num_gauss -> dense vst; pad cols sliced off below
        pad = ((0, 0), (0, Gp - G))
        a_mat = jnp.pad(a_mat, pad)
        b_mat = jnp.pad(b_mat, pad)
        c_mat = jnp.pad(c_mat, pad)

    use_marg = marginalized is not None
    scope_idx = jnp.asarray(scope, dtype=jnp.int32)

    # Fuse the scope gather into the matmuls: scatter parameter rows to their
    # feature positions in a zero [F,Gp] matrix, so the kernel consumes the raw
    # [B,F] activation stream in one HBM pass.  Fall back to a wrapper-side
    # gather only when that resident footprint would be large.
    if 3 * F * Gp * 4 <= (8 << 20):
        def scatter(m):
            return jnp.zeros((F, Gp), jnp.float32).at[scope_idx].set(m)
        a_mat, b_mat, c_mat = scatter(a_mat), scatter(b_mat), scatter(c_mat)
        x_k = inputs
        marg_k = marginalized
    else:
        x_k = jnp.take(inputs, scope_idx, axis=1)
        marg_k = (jnp.take(marginalized, scope_idx, axis=1)
                  if use_marg else None)

    if not use_marg:
        # Constant term collapses to one [1,Gp] row (sum over scope) -> saves a matmul.
        c_mat = jnp.sum(c_mat, axis=0, keepdims=True)

    # TODO(synk): if upstream activations are bf16, the x/marg stream could stay
    # bf16 through the DMA + MXU on v6e/v7x (halves HBM traffic); kept f32 here
    # to preserve exact torch semantics and avoid bf16 VPU emulation on v5e.
    out = _gauss_pallas_call(x_k, marg_k, a_mat, b_mat, c_mat,
                             use_marg=use_marg, tile_rows=tile_rows)
    return out[:, :G] if Gp != G else out


# ---------------------------------------------------------------------------
# Module machinery (mirrors the PyTorch classes)
# ---------------------------------------------------------------------------
class NodeVector:
    """JAX port of the abstract torch NodeVector."""

    def __init__(self, name):
        self.name = name

    def forward(self, *args, **kwargs):
        raise NotImplementedError(
            "NodeVector is an abstract class, it does not implement forward!")

    def __call__(self, *args, **kwargs):
        return self.forward(*args, **kwargs)

    def __hash__(self):
        return hash(self.name)

    def __eq__(self, other):
        return self.name == other.name

    def init_params(self, init_fn=None):
        pass


class GaussArgs:
    """Plain-python stand-in for the torch `args` namespace."""

    def __init__(self, num_gauss, gauss_min_sigma, gauss_max_sigma,
                 gauss_min_mean=None, gauss_max_mean=None,
                 gauss_mean_of_means=0.0, param_provider=None):
        self.num_gauss = num_gauss
        self.gauss_min_sigma = gauss_min_sigma
        self.gauss_max_sigma = gauss_max_sigma
        self.gauss_min_mean = gauss_min_mean
        self.gauss_max_mean = gauss_max_mean
        self.gauss_mean_of_means = gauss_mean_of_means
        self.param_provider = param_provider


class SimpleParamProvider:
    """Mimics args.param_provider.grab_leaf_parameters with jnp arrays."""

    def __init__(self, key):
        self._key = key

    def grab_leaf_parameters(self, scope, num_gauss):
        self._key, sub = jax.random.split(self._key)
        return 0.1 * jax.random.normal(sub, (len(scope), num_gauss),
                                       dtype=jnp.float32)


class GaussVector(NodeVector):
    """JAX/Pallas port of the torch GaussVector leaf node."""

    # TODO(synk): a RAT-SPN has many small leaf regions; batching several
    # regions into one pallas_call (packed [B, R*G] output) would amortize the
    # per-call / per-grid-step overhead further.

    def __init__(self, region, args, name, num_dims=0):
        super().__init__(name)
        self.local_size = len(region)
        self.args = args
        self.scope = sorted(list(region))
        self.size = args.num_gauss
        self.num_dims = num_dims
        self.means = args.param_provider.grab_leaf_parameters(
            self.scope, args.num_gauss)
        if args.gauss_min_sigma < args.gauss_max_sigma:
            self.sigma_params = args.param_provider.grab_leaf_parameters(
                self.scope, args.num_gauss)
        else:
            self.sigma_params = None

    def forward(self, inputs, marginalized=None):
        return _gauss_vector_forward(inputs, marginalized, self.means,
                                     self.sigma_params, self.scope, self.args)

    def init_params(self, init_fn=None, key=None):
        # TODO(synk): torch uses in-place nn.init.normal_ on nn.Parameter; here
        # parameters are functional jnp arrays re-drawn from an explicit key.
        if key is None:
            key = jax.random.PRNGKey(0)
        if init_fn is None:
            def init_fn(shape, k, mean=0.0):
                return mean + 0.1 * jax.random.normal(k, shape, jnp.float32)
        k1, k2 = jax.random.split(key)
        self.means = init_fn(self.means.shape, k1,
                             mean=self.args.gauss_mean_of_means)
        if self.sigma_params is not None:
            self.sigma_params = init_fn(self.sigma_params.shape, k2, mean=0.0)

    def num_params(self):
        result = self.means.size
        if self.sigma_params is not None:
            result += self.sigma_params.size
        return result


# ---------------------------------------------------------------------------
# Pure-JAX reference (mirrors the torch forward line by line)
# ---------------------------------------------------------------------------
def _reference_forward(inputs, means, sigma_params, scope, args,
                       marginalized=None):
    if args.gauss_min_sigma < args.gauss_max_sigma:
        sigma_ratio = jax.nn.sigmoid(sigma_params)
        sigma = args.gauss_min_sigma + (
            args.gauss_max_sigma - args.gauss_min_sigma) * sigma_ratio
    else:
        sigma = jnp.float32(1.0)
    m = means
    if args.gauss_max_mean:
        assert args.gauss_min_mean is not None
        mean_range = args.gauss_max_mean - args.gauss_min_mean
        m = jax.nn.sigmoid(means) * mean_range + args.gauss_min_mean
    scope_idx = jnp.asarray(scope, dtype=jnp.int32)
    x_local = jnp.take(inputs, scope_idx, axis=1)[:, :, None]   # [B, L, 1]
    # Normal(mu, sqrt(sigma)).log_prob(x):
    log_pdf_single = -0.5 * ((x_local - m) ** 2 / sigma
                             + jnp.log(sigma) + _LOG_2PI)
    if marginalized is not None:
        marg = jnp.clip(marginalized, 0.0, 1.0)
        marg_local = jnp.take(marg, scope_idx, axis=1)[:, :, None]
        log_pdf_single = log_pdf_single * (1.0 - marg_local)
    return jnp.sum(log_pdf_single, axis=1)


# ---------------------------------------------------------------------------
# Demo / self-test
# ---------------------------------------------------------------------------
if __name__ == "__main__":
    key = jax.random.PRNGKey(0)
    k_data, k_marg, k_prov, k_init, k_big = jax.random.split(key, 5)

    B, F, G = 16, 12, 32                       # batch, total features, num_gauss
    region = [1, 3, 4, 6, 7, 9, 10, 11]        # scope of this leaf region (L=8)

    args = GaussArgs(num_gauss=G,
                     gauss_min_sigma=0.1, gauss_max_sigma=1.0,
                     gauss_min_mean=None, gauss_max_mean=None,
                     gauss_mean_of_means=0.0,
                     param_provider=SimpleParamProvider(k_prov))

    gauss = GaussVector(region, args, "gauss_vector_0")
    gauss.init_params(key=k_init)
    assert gauss.num_params() == 2 * len(region) * G

    x = jax.random.normal(k_data, (B, F), dtype=jnp.float32)
    marginalized = jax.random.uniform(k_marg, (B, F), dtype=jnp.float32,
                                      minval=-0.2, maxval=1.2)

    TOL = dict(atol=1e-3, rtol=1e-3)

    # Plain forward.
    out = jax.block_until_ready(gauss(x))
    ref = _reference_forward(x, gauss.means, gauss.sigma_params,
                             gauss.scope, args)
    assert out.shape == (B, G) and out.dtype == jnp.float32
    assert bool(jnp.allclose(out, ref, **TOL))

    # Forward with marginalization mask.
    out_m = jax.block_until_ready(gauss(x, marginalized=marginalized))
    ref_m = _reference_forward(x, gauss.means, gauss.sigma_params,
                               gauss.scope, args, marginalized)
    assert bool(jnp.allclose(out_m, ref_m, **TOL))

    # Fixed-sigma branch (gauss_min_sigma == gauss_max_sigma -> sigma = 1.0).
    args_fixed = GaussArgs(num_gauss=G, gauss_min_sigma=1.0,
                           gauss_max_sigma=1.0, gauss_mean_of_means=0.0,
                           param_provider=SimpleParamProvider(k_prov))
    gauss_fixed = GaussVector(region, args_fixed, "gauss_vector_fixed")
    out_f = jax.block_until_ready(gauss_fixed(x))
    ref_f = _reference_forward(x, gauss_fixed.means, None,
                               gauss_fixed.scope, args_fixed)
    assert bool(jnp.allclose(out_f, ref_f, **TOL))

    # Mean-squash branch (gauss_max_mean truthy, matching torch semantics).
    args_sq = GaussArgs(num_gauss=G, gauss_min_sigma=0.1, gauss_max_sigma=1.0,
                        gauss_min_mean=-1.0, gauss_max_mean=1.0,
                        gauss_mean_of_means=0.0,
                        param_provider=SimpleParamProvider(k_prov))
    gauss_sq = GaussVector(region, args_sq, "gauss_vector_squash")
    out_s = jax.block_until_ready(gauss_sq(x, marginalized=marginalized))
    ref_s = _reference_forward(x, gauss_sq.means, gauss_sq.sigma_params,
                               gauss_sq.scope, args_sq, marginalized)
    assert bool(jnp.allclose(out_s, ref_s, **TOL))

    # Multi-step grid path (small tile_rows, partial last block, with marg).
    Bb = 44
    xb = jax.random.normal(k_big, (Bb, F), dtype=jnp.float32)
    margb = jax.random.uniform(k_big, (Bb, F), dtype=jnp.float32,
                               minval=-0.2, maxval=1.2)
    out_b = jax.block_until_ready(
        _gauss_vector_forward(xb, margb, gauss.means, gauss.sigma_params,
                              gauss.scope, args, tile_rows=16))
    ref_b = _reference_forward(xb, gauss.means, gauss.sigma_params,
                               gauss.scope, args, margb)
    assert out_b.shape == (Bb, G)
    assert bool(jnp.allclose(out_b, ref_b, **TOL))

    # NodeVector abstract/hash/eq contract preserved.
    nv = NodeVector("abstract")
    try:
        nv()
        raise RuntimeError("NodeVector.forward should have raised")
    except NotImplementedError:
        pass
    assert GaussVector(region, args, "a") == GaussVector(region, args, "a")
    assert hash(NodeVector("a")) == hash("a")

    print("KERNEL_OK")
</pallas_src>

<mosaic_0001>
module attributes {stable_mosaic.version = 11 : i64} {
  func.func @kernel(%arg0: i32, %arg1: memref<16x12xf32, #tpu.memory_space<vmem>>, %arg2: memref<12x128xf32, #tpu.memory_space<vmem>>, %arg3: memref<12x128xf32, #tpu.memory_space<vmem>>, %arg4: memref<1x128xf32, #tpu.memory_space<vmem>>, %arg5: memref<16x128xf32, #tpu.memory_space<vmem>>) attributes {dimension_semantics = [#tpu.dimension_semantics<parallel>], iteration_bounds = array<i64: 1>, scalar_prefetch = 0 : i64, scratch_operands = 0 : i64, tpu.core_type = #tpu.core_type<tc>, window_params = [{transform_indices = @transform_0, window_bounds = array<i64: 16, 12>}, {pipeline_mode = #tpu.pipeline_mode<synchronous>, transform_indices = @transform_1, window_bounds = array<i64: 12, 128>}, {pipeline_mode = #tpu.pipeline_mode<synchronous>, transform_indices = @transform_2, window_bounds = array<i64: 12, 128>}, {pipeline_mode = #tpu.pipeline_mode<synchronous>, transform_indices = @transform_3, window_bounds = array<i64: 1, 128>}, {transform_indices = @transform_4, window_bounds = array<i64: 16, 128>}]} {
    %c0 = arith.constant 0 : index
    %c0_0 = arith.constant 0 : index
    %0 = vector.load %arg1[%c0, %c0_0] : memref<16x12xf32, #tpu.memory_space<vmem>>, vector<16x12xf32>
    %1 = arith.mulf %0, %0 : vector<16x12xf32>
    %c0_1 = arith.constant 0 : index
    %c0_2 = arith.constant 0 : index
    %2 = vector.load %arg2[%c0_1, %c0_2] : memref<12x128xf32, #tpu.memory_space<vmem>>, vector<12x128xf32>
    %cst = arith.constant dense<0.000000e+00> : vector<16x128xf32>
    %3 = tpu.matmul %1, %2, %cst {dimension_numbers = #tpu.dot_dimension_numbers<[1], [0], [0], [1], [0, 0, 1, 1], [], []>, precision = #tpu.contract_precision<fp32>} : vector<16x12xf32>, vector<12x128xf32>, vector<16x128xf32> -> vector<16x128xf32>
    %c0_3 = arith.constant 0 : index
    %c0_4 = arith.constant 0 : index
    %4 = vector.load %arg3[%c0_3, %c0_4] : memref<12x128xf32, #tpu.memory_space<vmem>>, vector<12x128xf32>
    %cst_5 = arith.constant dense<0.000000e+00> : vector<16x128xf32>
    %5 = tpu.matmul %0, %4, %cst_5 {dimension_numbers = #tpu.dot_dimension_numbers<[1], [0], [0], [1], [0, 0, 1, 1], [], []>, precision = #tpu.contract_precision<fp32>} : vector<16x12xf32>, vector<12x128xf32>, vector<16x128xf32> -> vector<16x128xf32>
    %cst_6 = arith.constant 2.000000e+00 : f32
    %6 = vector.broadcast %cst_6 : f32 to vector<16x128xf32>
    %7 = arith.mulf %6, %5 : vector<16x128xf32>
    %8 = arith.subf %3, %7 : vector<16x128xf32>
    %c0_7 = arith.constant 0 : index
    %c0_8 = arith.constant 0 : index
    %9 = vector.load %arg4[%c0_7, %c0_8] : memref<1x128xf32, #tpu.memory_space<vmem>>, vector<1x128xf32>
    %10 = vector.broadcast %9 : vector<1x128xf32> to vector<16x128xf32>
    %11 = arith.addf %8, %10 : vector<16x128xf32>
    %cst_9 = arith.constant -5.000000e-01 : f32
    %12 = vector.broadcast %cst_9 : f32 to vector<16x128xf32>
    %13 = arith.mulf %12, %11 : vector<16x128xf32>
    %c0_10 = arith.constant 0 : index
    %c0_11 = arith.constant 0 : index
    %14 = vector.load %arg5[%c0_10, %c0_11] : memref<16x128xf32, #tpu.memory_space<vmem>>, vector<16x128xf32>
    tpu.vector_store %arg5[%c0_10, %c0_11], %13 {strides = array<i32>} : memref<16x128xf32, #tpu.memory_space<vmem>>, vector<16x128xf32>,
    return
  }
  func.func @transform_0(%arg0: i32) -> (i32, i32) {
    %c0_i32 = arith.constant 0 : i32
    %c0_i32_0 = arith.constant 0 : i32
    return %arg0, %c0_i32 : i32, i32
  }
  func.func @transform_1(%arg0: i32) -> (i32, i32) {
    %c0_i32 = arith.constant 0 : i32
    %c0_i32_0 = arith.constant 0 : i32
    %c0_i32_1 = arith.constant 0 : i32
    return %c0_i32, %c0_i32_0 : i32, i32
  }
  func.func @transform_2(%arg0: i32) -> (i32, i32) {
    %c0_i32 = arith.constant 0 : i32
    %c0_i32_0 = arith.constant 0 : i32
    %c0_i32_1 = arith.constant 0 : i32
    return %c0_i32, %c0_i32_0 : i32, i32
  }
  func.func @transform_3(%arg0: i32) -> (i32, i32) {
    %c0_i32 = arith.constant 0 : i32
    %c0_i32_0 = arith.constant 0 : i32
    %c0_i32_1 = arith.constant 0 : i32
    return %c0_i32, %c0_i32_0 : i32, i32
  }
  func.func @transform_4(%arg0: i32) -> (i32, i32) {
    %c0_i32 = arith.constant 0 : i32
    %c0_i32_0 = arith.constant 0 : i32
    return %arg0, %c0_i32 : i32, i32
  }
}

</mosaic_0001>

<bundles_post_ra>
// kernel: tpu_custom_call.1
= control target key start
LH: loop header
LB: loop body
LE: loop exit
PB: predicated region body
PF: predicated region fallthrough
CT: control target
= control target key end

     0   :  { %9 = vsyncpa [#allocation3], 0  ;;  %s702_s0 = inlined_call_operand.hbm [shape: f32[16,12], index: 0, kind: input, shape index: {}]   ;;  %s703_s1 = inlined_call_operand.hbm [shape: f32[12,128], index: 1, kind: input, shape index: {}]   ;;  %s704_s2 = inlined_call_operand.hbm [shape: f32[12,128], index: 2, kind: input, shape index: {}]   ;;  %s705_s3 = inlined_call_operand.vmem [shape: f32[1,128], index: 3, kind: input, shape index: {}]   ;;  %s706_s4 = inlined_call_operand.hbm [shape: f32[16,128], index: 4, kind: output, shape index: {}]  }
   0x1   :  { %10 = vsyncpa [#allocation6], 0 }
   0x2   :  { %11 = vsyncpa [#allocation4], 0  ;;  %s29_s17 = sshll.u32 %s703_s1, 4  ;;  %s616_s18 = smov [#allocation5]   ;;  %s30_s17 = int_to_ptr.hbm [resolvable:$true] %s29_s17 }
   0x3   :  { %s31_s19 = sshll.u32 %s616_s18, 4  ;;  %s16_s22 = sshll.u32 %s702_s0, 4  ;;  %s32_s19 = int_to_ptr.vmem [resolvable:$true] %s31_s19  ;;  %s17_s22 = int_to_ptr.hbm [resolvable:$true] %s16_s22 }
   0x4   :  { %s617_s23 = smov 128   ;;  %s618_s24 = smov 8  }
   0x5   :  { %37 = dma.hbm_to_vmem [thread:$0]  %s30_s17, 256, %s32_s19, [#allocation6], %s617_s23, %s617_s23, %s618_s24  }
   0x6   :  { %s619_s25 = smov [#allocation2]   ;;  %s42_s1 = sshll.u32 %s704_s2, 4  ;;  %s43_s1 = int_to_ptr.hbm [resolvable:$true] %s42_s1 }
   0x7   :  { %s18_s26 = sshll.u32 %s619_s25, 4  ;;  %s620_s0 = smov [#allocation7]   ;;  %s19_s26 = int_to_ptr.vmem [resolvable:$true] %s18_s26 }
   0x8   :  { %24 = dma.hbm_to_vmem [thread:$0]  %s17_s22, 256, %s19_s26, [#allocation3], %s617_s23, %s617_s23, %s618_s24  }
   0x9   :  { %s44_s29 = sshll.u32 %s620_s0, 4  ;;  %s45_s29 = int_to_ptr.vmem [resolvable:$true] %s44_s29 }
   0xa   :  { %50 = dma.hbm_to_vmem [thread:$0]  %s43_s1, 256, %s45_s29, [#allocation6], %s617_s23, %s617_s23, %s618_s24  }
   0xb   :  { %610 = dma.done.wait [#allocation3], 256  }
   0xc   :  { %611 = vsyncadd [#allocation3], 4294967040 }
   0xd   :  { %612 = dma.done.wait [#allocation6], 512  }
   0xe   :  { %613 = vsyncadd [#allocation6], 4294966784  ;;  %vm78_vm0 = vcmask 1043456   ;;  %v70_v0 = vld [vmem:[#allocation5 + $0x8] sm:$0xf]  ;;  %v69_v2 = vld [vmem:[#allocation5] sm:$0xff] }
   0xf   :  { %v273_v1 = vld [vmem:[#allocation7 + $0x8] sm:$0xf]  ;;  %vm71_vm1 = vcmask 97280   ;;  %v80_v3 = vsel %vm78_vm0, %v70_v0, 0  ;;  %v665_v5 = vand.u32 4294901760, %v69_v2  ;;  %v65_v6 = vld [vmem:[#allocation2] sm:$0xff] }
  0x10   :  { %v281_v4 = vsel %vm78_vm0, %v273_v1, 0  ;;  %v66_v7 = vld [vmem:[#allocation2 + $0x8] sm:$0xff]  ;;  %v272_v8 = vld [vmem:[#allocation7] sm:$0xff]  ;;  %v96_v9 = vand.u32 4294901760, %v80_v3  ;;  %v67_v10 = vmul.f32 %v65_v6, %v65_v6  ;;  %v275_v11 = vsel %vm71_vm1, %v65_v6, 0  ;;  %s621_s5 = smov [#allocation8]  }
  0x11   :  { %v297_v12 = vand.u32 4294901760, %v281_v4  ;;  %v138_v13 = vsub.f32 %v69_v2, %v665_v5  ;;  %v68_v14 = vmul.f32 %v66_v7, %v66_v7  ;;  %v669_v15 = vand.u32 4294901760, %v272_v8  ;;  %s491_s6 = sshll.u32 %s621_s5, 4  ;;  %s492_s6 = int_to_ptr.vmem [resolvable:$true] %s491_s6 }
  0x12   :  { %v132_v16 = vsub.f32 %v80_v3, %v96_v9  ;;  %198 = vmatpush.msra.mxu3 %v96_v9  ;;  %97 = vmatpush.msra.mxu0 %v96_v9  ;;  %v73_v17 = vsel %vm71_vm1, %v67_v10, 0  ;;  %v672_v18 = vand.u32 4294901760, %v275_v11  ;;  %v278_v39 = vsel %vm71_vm1, %v66_v7, 0 }
  0x13   :  { %v333_v19 = vsub.f32 %v281_v4, %v297_v12  ;;  %v674_v20 = vand.u32 4294901760, %v73_v17  ;;  %v139_v21 = vand.u32 4294901760, %v138_v13  ;;  %v76_v22 = vsel %vm71_vm1, %v68_v14, 0 }
  0x14   :  { %v339_v23 = vsub.f32 %v272_v8, %v669_v15  ;;  %168 = vmatpush.msra.mxu2 %v132_v16  ;;  %200 = vmatpush.msra.mxu3 %v665_v5  ;;  %v133_v24 = vand.u32 4294901760, %v132_v16  ;;  %v108_v26 = vand.u32 4294901760, %v76_v22  ;;  %v302_v35 = vsub.f32 %v275_v11, %v672_v18 }
  0x15   :  { %v334_v25 = vand.u32 4294901760, %v333_v19  ;;  %v101_v27 = vsub.f32 %v73_v17, %v674_v20  ;;  %99 = vmatpush.msra.mxu0 %v665_v5  ;;  %v140_v28 = vsub.f32 %v138_v13, %v139_v21  ;;  %v309_v45 = vand.u32 4294901760, %v278_v39 }
  0x16   :  { %v340_v29 = vand.u32 4294901760, %v339_v23  ;;  %171 = vmatpush.msra.mxu2 %v138_v13  ;;  %v134_v30 = vsub.f32 %v132_v16, %v133_v24  ;;  %v109_v32 = vsub.f32 %v76_v22, %v108_v26  ;;  %v303_v44 = vand.u32 4294901760, %v302_v35 }
  0x17   :  { %231 = vmatpush.msrb.mxu0 %v133_v24  ;;  %v335_v31 = vsub.f32 %v333_v19, %v334_v25  ;;  %174 = vmatmul.f32.vlgmr.msra.gmra.mxu2 %v101_v27  ;;  %v102_v33 = vand.u32 4294901760, %v101_v27  ;;  %v141_v37 = vand.u32 4294901760, %v140_v28  ;;  %v310_v48 = vsub.f32 %v278_v39, %v309_v45 }
  0x18   :  { %v341_v34 = vsub.f32 %v339_v23, %v340_v29  ;;  %v135_v36 = vand.u32 4294901760, %v134_v30  ;;  %298 = vmatpush.msrb.mxu2 %v297_v12  ;;  %v110_v41 = vand.u32 4294901760, %v109_v32  ;;  %v304_v47 = vsub.f32 %v302_v35, %v303_v44 }
  0x19   :  { %v336_v38 = vand.u32 4294901760, %v335_v31  ;;  %235 = vmatpush.msrb.mxu0 %v139_v21  ;;  %204 = vmatmul.f32.vlgmr.msra.gmra.mxu3 %v102_v33  ;;  %v103_v40 = vsub.f32 %v101_v27, %v102_v33  ;;  %v311_v51 = vand.u32 4294901760, %v310_v48 }
  0x1a   :  { %v342_v42 = vand.u32 4294901760, %v341_v34  ;;  %136 = vmatpush.msra.mxu1 %v135_v36  ;;  %300 = vmatpush.msrb.mxu2 %v669_v15  ;;  %v111_v46 = vsub.f32 %v109_v32, %v110_v41  ;;  %v305_v50 = vand.u32 4294901760, %v304_v47 }
  0x1b   :  { %337 = vmatpush.msrb.mxu3 %v336_v38  ;;  %v104_v43 = vand.u32 4294901760, %v103_v40  ;;  %v312_v52 = vsub.f32 %v310_v48, %v311_v51 }
  0x1c   :  { %142 = vmatpush.msra.mxu1 %v141_v37  ;;  %432 = vmatpush.msra.mxu2 %v334_v25  ;;  %v112_v49 = vand.u32 4294901760, %v111_v46 }
  0x1d   :  { %343 = vmatpush.msrb.mxu3 %v342_v42  ;;  %105 = vmatmul.f32.vlgmr.msra.gmra.mxu0 %v104_v43  ;;  %v313_v53 = vand.u32 4294901760, %v312_v52 }
  0x1e   :  { %144 = vmatmul.f32.vlgmr.msra.gmra.mxu1 %v674_v20  ;;  %369 = vmatpush.msra.mxu0 %v333_v19 }
  0x1f   :  { %260 = vmatpush.msrb.mxu1 %v96_v9  ;;  %179 = vmatmul.f32.gmra.mxu2 %v109_v32 }
  0x20   :  { %461 = vmatpush.msra.mxu3 %v297_v12  ;;  %436 = vmatpush.msra.mxu2 %v340_v29 }
  0x21   :  { %262 = vmatpush.msrb.mxu1 %v665_v5  ;;  %210 = vmatmul.f32.gmra.mxu3 %v110_v41 }
  0x22   :  { %372 = vmatpush.msra.mxu0 %v339_v23  ;;  %463 = vmatpush.msra.mxu3 %v669_v15 }
  0x23   :  { %399 = vmatpush.msra.mxu1 %v297_v12 }
  0x25   :  { %401 = vmatpush.msra.mxu1 %v669_v15  ;;  %113 = vmatmul.f32.gmra.mxu0 %v112_v49 }
  0x26   :  { %148 = vmatmul.f32.gmra.mxu1 %v108_v26 }
  0x27   :  { %306 = vmatmul.f32.vlgmr.msrb.gmra.mxu2 %v305_v50 }
  0x29   :  { %345 = vmatmul.f32.vlgmr.msrb.gmra.mxu3 %v672_v18 }
  0x2d   :  { %237 = vmatmul.f32.vlgmr.msrb.gmra.mxu0 %v674_v20 }
  0x2e   :  { %264 = vmatmul.f32.vlgmr.msrb.gmra.mxu1 %v674_v20 }
  0x2f   :  { %314 = vmatmul.f32.gmra.mxu2 %v313_v53 }
  0x31   :  { %349 = vmatmul.f32.gmra.mxu3 %v309_v45 }
  0x35   :  { %241 = vmatmul.f32.gmra.mxu0 %v108_v26 }
  0x36   :  { %268 = vmatmul.f32.gmra.mxu1 %v108_v26  ;;  %v513_v26 = vld [vmem:[%s705_s3] ss:$0 sm:$0xff]  ;;  %s493_s3 = sshll.u32 %s706_s4, 4  ;;  %s494_s3 = int_to_ptr.hbm [resolvable:$true] %s493_s3 }
  0x37   :  { %438 = vmatmul.f32.vlgmr.msra.gmra.mxu2 %v672_v18 }
  0x39   :  { %465 = vmatmul.f32.vlgmr.msra.gmra.mxu3 %v672_v18 }
  0x3d   :  { %375 = vmatmul.f32.vlgmr.msra.gmra.mxu0 %v302_v35 }
  0x3e   :  { %405 = vmatmul.f32.vlgmr.msra.gmra.mxu1 %v303_v44 }
  0x3f   :  { %442 = vmatmul.f32.gmra.mxu2 %v309_v45 }
  0x41   :  { %469 = vmatmul.f32.gmra.mxu3 %v309_v45 }
  0x45   :  { %380 = vmatmul.f32.gmra.mxu0 %v310_v48 }
  0x46   :  { %411 = vmatmul.f32.gmra.mxu1 %v311_v51 }
  0x9a   :  { %v106_v54 = vpop.f32.mrf.mxu0  ;;  %v175_v56 = vpop.f32.mrf.mxu2 }
  0x9b   :  { %v145_v55 = vpop.f32.mrf.mxu1 }
  0x9c   :  { %v205_v57 = vpop.f32.mrf.mxu3  ;;  %v146_v6 = vadd.f32 %v145_v55, %v106_v54 }
  0x9e   :  { %v176_v7 = vadd.f32 %v175_v56, %v146_v6 }
  0xa0   :  { %v206_v14 = vadd.f32 %v205_v57, %v176_v7 }
  0xa2   :  { %v114_v58 = vpop.f32.mrf.mxu0  ;;  %v180_v60 = vpop.f32.mrf.mxu2 }
  0xa3   :  { %v149_v59 = vpop.f32.mrf.mxu1 }
  0xa4   :  { %v211_v61 = vpop.f32.mrf.mxu3  ;;  %v150_v15 = vadd.f32 %v149_v59, %v114_v58 }
  0xa6   :  { %v181_v19 = vadd.f32 %v180_v60, %v150_v15 }
  0xa8   :  { %v212_v29 = vadd.f32 %v211_v61, %v181_v19 }
  0xaa   :  { %v238_v62 = vpop.f32.mrf.mxu0  ;;  %v307_v0 = vpop.f32.mrf.mxu2 }
  0xab   :  { %v265_v63 = vpop.f32.mrf.mxu1  ;;  %v239_v17 = vadd.f32 %v238_v62, %v206_v14 }
  0xac   :  { %v346_v1 = vpop.f32.mrf.mxu3 }
  0xad   :  { %v347_v8 = vadd.f32 %v346_v1, %v307_v0  ;;  %v266_v24 = vadd.f32 %v265_v63, %v239_v17 }
  0xb2   :  { %v242_v2 = vpop.f32.mrf.mxu0  ;;  %v315_v4 = vpop.f32.mrf.mxu2 }
  0xb3   :  { %v269_v3 = vpop.f32.mrf.mxu1  ;;  %v243_v33 = vadd.f32 %v242_v2, %v212_v29 }
  0xb4   :  { %v350_v5 = vpop.f32.mrf.mxu3 }
  0xb5   :  { %v351_v20 = vadd.f32 %v350_v5, %v315_v4  ;;  %v270_v38 = vadd.f32 %v269_v3, %v243_v33 }
  0xba   :  { %v376_v9 = vpop.f32.mrf.mxu0  ;;  %v439_v12 = vpop.f32.mrf.mxu2 }
  0xbb   :  { %v406_v10 = vpop.f32.mrf.mxu1  ;;  %v377_v11 = vadd.f32 %v376_v9, %v347_v8 }
  0xbc   :  { %v466_v13 = vpop.f32.mrf.mxu3 }
  0xbd   :  { %v407_v16 = vadd.f32 %v406_v10, %v377_v11 }
  0xbf   :  { %v440_v18 = vadd.f32 %v439_v12, %v407_v16 }
  0xc1   :  { %v467_v21 = vadd.f32 %v466_v13, %v440_v18 }
  0xc2   :  { %v381_v22 = vpop.f32.mrf.mxu0  ;;  %v443_v28 = vpop.f32.mrf.mxu2 }
  0xc3   :  { %v412_v23 = vpop.f32.mrf.mxu1  ;;  %v473_v25 = vmul.f32 2.0, %v467_v21  ;;  %v382_v27 = vadd.f32 %v381_v22, %v351_v20 }
  0xc4   :  { %v470_v32 = vpop.f32.mrf.mxu3 }
  0xc5   :  { %v475_v30 = vsub.f32 %v266_v24, %v473_v25  ;;  %v413_v31 = vadd.f32 %v412_v23, %v382_v27 }
  0xc7   :  { %v481_v34 = vadd.f32 %v513_v26, %v475_v30  ;;  %v444_v35 = vadd.f32 %v443_v28, %v413_v31 }
  0xc9   :  { %v483_v36 = vmul.f32 -0.5, %v481_v34  ;;  %v471_v37 = vadd.f32 %v470_v32, %v444_v35 }
  0xcb   :  { %485 = vst [vmem:[#allocation8] sm:$0xff] %v483_v36  ;;  %v474_v39 = vmul.f32 2.0, %v471_v37 }
  0xcd   :  { %v476_v40 = vsub.f32 %v270_v38, %v474_v39 }
  0xcf   :  { %v482_v41 = vadd.f32 %v513_v26, %v476_v40 }
  0xd1   :  { %v484_v42 = vmul.f32 -0.5, %v482_v41 }
  0xd3   :  { %486 = vst [vmem:[#allocation8 + $0x8] sm:$0xff] %v484_v42 }
  0xd4   :  { %499 = dma.vmem_to_hbm [thread:$0]  %s492_s6, 256, %s494_s3, [#allocation4], %s617_s23, %s617_s23, %s618_s24  }
  0xd5   :  { %614 = dma.done.wait [#allocation4], 256  }
  0xd6   :  { %615 = vsyncadd [#allocation4], 4294967040 }
  0xd7   :  { %504 = vsyncpa [#allocation3], 1 }
  0xd8   :  { %505 = vsyncpa [#allocation6], 1 }
  0xd9   :  { %506 = vsyncpa [#allocation4], 1 }

</bundles_post_ra>
